<compile_context>
chip_gen: v6e
topology: v6e:2x2x1
jax: 0.10.0
libtpu: 0.0.40
codegen_flags: <defaults>
</compile_context>

<pallas_src>
import functools
import math

import jax
import jax.numpy as jnp
from jax.experimental import pallas as pl
from jax.experimental.pallas import tpu as pltpu


_DEFAULT_TARGET_BYTES = 8 << 20          # ~8 MiB per input block


def _prod(xs):
    return math.prod(int(v) for v in xs)


def _round_down(x, m):
    return max((x // m) * m, m)


@functools.lru_cache(maxsize=None)
def _vmem_limit():
    """Generation-aware VMEM limit: ~3/4 of physical, clamped to [48, 96] MiB."""
    mib = 1024 * 1024
    try:
        cap = int(pltpu.get_tpu_info().vmem_capacity_bytes)
    except Exception:
        return 48 * mib
    return min(96 * mib, max(48 * mib, (cap * 3) // 4))


def _in_spec(block_shape, index_map, steps):
    """Input BlockSpec with 3-deep buffering when the grid is long enough."""
    if steps < 3:
        return pl.BlockSpec(block_shape, index_map)
    try:
        return pl.BlockSpec(block_shape, index_map, pipeline_mode=pl.Buffered(3))
    except Exception:
        return pl.BlockSpec(block_shape, index_map)


# ---------------------------------------------------------------------------
# Case A: trailing reduction — x2d (M, R) -> (M,), mean over the lane axis.
# ---------------------------------------------------------------------------
def _mean_rows_kernel(x_ref, o_ref, acc_ref, *, red_size, num_k_blocks,
                      k_per_part, need_mask, precision):
    k = pl.program_id(1)
    if k_per_part is None:
        global_k = k
    else:
        # Split mode: grid axis 0 partitions the reduction range.
        global_k = pl.program_id(0) * k_per_part + k

    @pl.when(k == 0)
    def _():
        acc_ref[...] = jnp.zeros_like(acc_ref)

    tm, tr = x_ref.shape

    def accum(x):
        # ones(1, TR) . x(TM, TR)^T -> (1, TM): row sums land lane-major, so
        # the accumulator and the final store are lane-dense (no masked
        # 1-lane stores, no relayout).
        ones = jnp.ones((1, tr), dtype=x.dtype)
        acc_ref[...] += jax.lax.dot_general(
            ones, x,
            dimension_numbers=(((1,), (1,)), ((), ())),
            preferred_element_type=jnp.float32,
            precision=precision)

    if need_mask:
        # Only the last (or clamped out-of-range duplicate) reduction block
        # carries padded lanes; full blocks run unmasked so the VPU select
        # work never competes with the DMA window.
        @pl.when(global_k < num_k_blocks - 1)
        def _():
            accum(x_ref[...])

        @pl.when(global_k >= num_k_blocks - 1)
        def _():
            lane = jax.lax.broadcasted_iota(jnp.int32, (1, tr), 1)
            valid = red_size - global_k * tr   # <= 0 for duplicate blocks
            accum(jnp.where(lane < valid, x_ref[...], 0))
    else:
        accum(x_ref[...])

    @pl.when(k == pl.num_programs(1) - 1)
    def _():
        o_ref[...] = (acc_ref[...] * (1.0 / red_size)).astype(o_ref.dtype)


def _choose_row_tiles(M, R, itemsize, target_bytes):
    """(TM, TR): TM multiple of 128 or == M; TR multiple of 128 or == R."""
    max_elems = max(target_bytes // itemsize, 8 * 128)
    if R <= max_elems // 128:
        # Full reduction axis per block; as many rows as the byte budget allows.
        tm = _round_down(max_elems // R, 128)
        return (M, R) if tm >= M else (tm, R)
    # Reduction axis needs tiling.
    tm = M if M < 128 else 128
    tr = _round_down(max_elems // tm, 128)
    return tm, min(tr, R)


def _mean_rows(x2d, *, target_bytes=None, vmem_limit=None):
    if target_bytes is None:
        target_bytes = _DEFAULT_TARGET_BYTES
    if vmem_limit is None:
        vmem_limit = _vmem_limit()
    M, R = x2d.shape
    TM, TR = _choose_row_tiles(M, R, x2d.dtype.itemsize, target_bytes)
    nrb = pl.cdiv(M, TM)
    nkb = pl.cdiv(R, TR)

    precision = (jax.lax.Precision.HIGHEST
                 if x2d.dtype == jnp.float32 else None)

    if not (nrb == 1 and nkb >= 2):
        # Standard path: rows-parallel x reduction-arbitrary grid.
        # Rows beyond M in the last row block reduce Pallas edge-padding
        # garbage and are sliced off; benign because row sums are independent.
        kernel = functools.partial(
            _mean_rows_kernel, red_size=R, num_k_blocks=nkb, k_per_part=None,
            need_mask=(R % TR) != 0, precision=precision)
        out = pl.pallas_call(
            kernel,
            out_shape=jax.ShapeDtypeStruct((1, nrb * TM), x2d.dtype),
            grid_spec=pltpu.PrefetchScalarGridSpec(
                num_scalar_prefetch=0,
                grid=(nrb, nkb),
                in_specs=[_in_spec((TM, TR), lambda i, k: (i, k), nrb * nkb)],
                # Lane-dense, padded row vector of per-row means.
                out_specs=pl.BlockSpec((1, TM), lambda i, k: (0, i)),
                scratch_shapes=[pltpu.VMEM((1, TM), jnp.float32)],
            ),
            compiler_params=pltpu.CompilerParams(
                dimension_semantics=("parallel", "arbitrary"),
                vmem_limit_bytes=vmem_limit),
        )(x2d)
        return out[0, :M]

    # Single row block but multiple reduction blocks: split the reduction
    # range into two partial sums on a "parallel" axis so both TensorCores
    # (v7x megacore) get work; combine the two (1, M) partials in the wrapper.
    kpp = pl.cdiv(nkb, 2)
    need_mask = (R % TR) != 0 or (2 * kpp != nkb)
    kernel = functools.partial(
        _mean_rows_kernel, red_size=R, num_k_blocks=nkb, k_per_part=kpp,
        need_mask=need_mask, precision=precision)
    out = pl.pallas_call(
        kernel,
        out_shape=jax.ShapeDtypeStruct((2, TM), jnp.float32),
        grid_spec=pltpu.PrefetchScalarGridSpec(
            num_scalar_prefetch=0,
            grid=(2, kpp),
            in_specs=[_in_spec(
                (TM, TR),
                # Clamp out-of-range block indices (odd nkb); their
                # contribution is fully masked to zero inside the kernel.
                lambda p, k: (0, jnp.minimum(p * kpp + k, nkb - 1)),
                2 * kpp)],
            out_specs=pl.BlockSpec((1, TM), lambda p, k: (p, 0)),
            scratch_shapes=[pltpu.VMEM((1, TM), jnp.float32)],
        ),
        compiler_params=pltpu.CompilerParams(
            dimension_semantics=("parallel", "arbitrary"),
            vmem_limit_bytes=vmem_limit),
    )(x2d)
    return (out[0, :M] + out[1, :M]).astype(x2d.dtype)


# ---------------------------------------------------------------------------
# Case B: contiguous non-trailing reduction — x3d (O, R, I) -> (O, I),
# mean over the middle (sublane) axis.  Avoids any HBM transpose.
# ---------------------------------------------------------------------------
def _mean_mid_kernel(x_ref, o_ref, acc_ref, *, red_size, need_mask):
    r = pl.program_id(2)
    to, tr, ti = x_ref.shape
    sub = acc_ref.shape[1]
    groups = tr // sub

    @pl.when(r == 0)
    def _():
        acc_ref[...] = jnp.zeros_like(acc_ref)

    def accum(x):
        # Fold the TR rows of this block onto `sub` sublanes with plain vreg
        # adds; the XLU sublane collapse happens once, at the last r step.
        x = x.astype(jnp.float32).reshape(to, groups, sub, ti)
        acc_ref[...] += jnp.sum(x, axis=1)

    if need_mask:
        @pl.when(r < pl.num_programs(2) - 1)
        def _():
            accum(x_ref[...])

        @pl.when(r == pl.num_programs(2) - 1)
        def _():
            ridx = jax.lax.broadcasted_iota(jnp.int32, (1, tr, 1), 1)
            valid = red_size - r * tr
            accum(jnp.where(ridx < valid, x_ref[...], 0))
    else:
        accum(x_ref[...])

    @pl.when(r == pl.num_programs(2) - 1)
    def _():
        total = jnp.sum(acc_ref[...], axis=1, keepdims=True)
        o_ref[...] = (total * (1.0 / red_size)).astype(o_ref.dtype)


def _choose_mid_tiles(O, R, I, itemsize, target_bytes):
    """(TO, TR, TI): TR multiple of 8 or == R; TI multiple of 128 or == I."""
    max_elems = max(target_bytes // itemsize, 8 * 128)
    if R * I <= max_elems:
        to = max(1, min(O, max_elems // (R * I)))
        return to, R, I
    if I <= max_elems // 8:
        # Full inner axis (lane-dense, long contiguous DMA rows); grow TR.
        tr = min(R, max(8, ((max_elems // I) // 8) * 8))
        return 1, tr, I
    # Inner axis alone exceeds the budget at 8 sublanes: cap TI (multiple of
    # 128) and spend the remaining budget on TR.
    ti = min(_round_down(I, 128), _round_down(max_elems // 8, 128))
    tr = min(R, max(8, ((max_elems // ti) // 8) * 8))
    return 1, tr, ti


def _mean_middle(x3d, *, target_bytes=None, vmem_limit=None):
    if target_bytes is None:
        target_bytes = _DEFAULT_TARGET_BYTES
    if vmem_limit is None:
        vmem_limit = _vmem_limit()
    O, R, I = x3d.shape
    TO, TR, TI = _choose_mid_tiles(O, R, I, x3d.dtype.itemsize, target_bytes)
    nob = pl.cdiv(O, TO)
    nib = pl.cdiv(I, TI)
    nrb = pl.cdiv(R, TR)

    # Accumulate onto 8 sublanes when TR allows it (pure VPU adds per step);
    # otherwise keep the whole (small, single-step) TR extent.
    sub = 8 if TR % 8 == 0 else TR

    kernel = functools.partial(_mean_mid_kernel, red_size=R,
                               need_mask=(R % TR) != 0)
    out = pl.pallas_call(
        kernel,
        out_shape=jax.ShapeDtypeStruct((O, 1, I), x3d.dtype),
        grid_spec=pltpu.PrefetchScalarGridSpec(
            num_scalar_prefetch=0,
            grid=(nob, nib, nrb),
            in_specs=[_in_spec((TO, TR, TI), lambda o, i, r: (o, r, i),
                               nob * nib * nrb)],
            out_specs=pl.BlockSpec((TO, 1, TI), lambda o, i, r: (o, 0, i)),
            scratch_shapes=[pltpu.VMEM((TO, sub, TI), jnp.float32)],
        ),
        compiler_params=pltpu.CompilerParams(
            dimension_semantics=("parallel", "parallel", "arbitrary"),
            vmem_limit_bytes=vmem_limit),
    )(x3d)
    return out[:, 0, :]


# ---------------------------------------------------------------------------
# Module wrapper: torch.mean(x, dim=self.dim, keepdim=self.keepdim)
# ---------------------------------------------------------------------------
class Mean:
    def __init__(self, dim, keepdim=True):
        self.dim = (dim,) if isinstance(dim, int) else tuple(dim)
        self.keepdim = keepdim

    def __call__(self, x):
        ndim = x.ndim
        red = tuple(sorted(d % ndim for d in self.dim))

        # TODO(synk): torch.mean raises on integer dtypes without an explicit
        # dtype; here we promote to float32 instead.
        if not jnp.issubdtype(x.dtype, jnp.floating):
            x = x.astype(jnp.float32)

        orig_shape = x.shape

        # Group the reduced axes into contiguous runs.  Each run is reduced by
        # a dedicated kernel (trailing -> row kernel, otherwise -> middle-axis
        # kernel), processed right-to-left so earlier axis indices stay valid.
        # Sequential full-axis means compose exactly, and every later pass
        # reads an already-reduced (much smaller) intermediate — no HBM
        # transpose round trip for non-contiguous dim tuples.
        runs = []
        start = prev = red[0]
        for a in red[1:]:
            if a == prev + 1:
                prev = a
            else:
                runs.append((start, prev))
                start = prev = a
        runs.append((start, prev))

        out = x
        for a, b in reversed(runs):
            shp = out.shape
            n = out.ndim
            r_sz = _prod(shp[a:b + 1])
            if b == n - 1:
                rows = _prod(shp[:a])
                flat = _mean_rows(out.reshape(max(rows, 1), r_sz))
                out = flat.reshape(shp[:a])
            else:
                o_sz = _prod(shp[:a])
                i_sz = _prod(shp[b + 1:])
                out = _mean_middle(out.reshape(max(o_sz, 1), r_sz, i_sz))
                out = out.reshape(shp[:a] + shp[b + 1:])

        if self.keepdim:
            out = out.reshape(tuple(1 if a in red else orig_shape[a]
                                    for a in range(ndim)))
        return out


if __name__ == "__main__":
    key = jax.random.PRNGKey(0)
    k1, k2, k3 = jax.random.split(key, 3)

    # NCHW input, global average pool over spatial dims (trailing reduction).
    x = jax.random.normal(k1, (2, 4, 16, 16), dtype=jnp.float32)
    y = Mean(dim=(2, 3), keepdim=True)(x)
    jax.block_until_ready(y)
    ref = jnp.mean(x, axis=(2, 3), keepdims=True)
    assert y.shape == ref.shape == (2, 4, 1, 1)
    assert jnp.allclose(y, ref, atol=1e-3, rtol=1e-3)

    # Channel mean (non-trailing axis), keepdim=False: middle-axis kernel.
    y2 = Mean(dim=1, keepdim=False)(x)
    jax.block_until_ready(y2)
    ref2 = jnp.mean(x, axis=1, keepdims=False)
    assert y2.shape == ref2.shape == (2, 16, 16)
    assert jnp.allclose(y2, ref2, atol=1e-5, rtol=1e-5)

    # Non-contiguous reduction axes: two passes, no HBM transpose.
    y3 = Mean(dim=(0, 2), keepdim=True)(x)
    jax.block_until_ready(y3)
    ref3 = jnp.mean(x, axis=(0, 2), keepdims=True)
    assert y3.shape == ref3.shape == (1, 4, 1, 16)
    assert jnp.allclose(y3, ref3, atol=1e-5, rtol=1e-5)

    # Larger trailing reduction exercising reduction-axis tiling + last-step
    # masking (MXU-accumulated sums: matmul-class tolerance).
    x3 = jax.random.normal(k2, (256, 20000), dtype=jnp.float32)
    y4 = Mean(dim=-1, keepdim=False)(x3)
    jax.block_until_ready(y4)
    ref4 = jnp.mean(x3, axis=-1)
    assert y4.shape == ref4.shape == (256,)
    assert jnp.allclose(y4, ref4, atol=1e-3, rtol=1e-3)

    # Exercise the 2-way reduction-split path (single row block, multiple
    # reduction blocks) with a small tile budget.
    x4 = jax.random.normal(k3, (4, 9000), dtype=jnp.float32)
    y5 = _mean_rows(x4, target_bytes=64 * 1024)
    jax.block_until_ready(y5)
    ref5 = jnp.mean(x4, axis=-1)
    assert y5.shape == ref5.shape == (4,)
    assert jnp.allclose(y5, ref5, atol=1e-3, rtol=1e-3)

    print("KERNEL_OK")
</pallas_src>

<mosaic_0001>
module attributes {stable_mosaic.version = 11 : i64} {
  func.func @_mean_rows_kernel(%arg0: i32, %arg1: i32, %arg2: memref<8x256xf32, #tpu.memory_space<vmem>>, %arg3: memref<1x8xf32, #tpu.memory_space<vmem>>, %arg4: memref<1x8xf32, #tpu.memory_space<vmem>>) attributes {dimension_semantics = [#tpu.dimension_semantics<parallel>, #tpu.dimension_semantics<arbitrary>], iteration_bounds = array<i64: 1, 1>, scalar_prefetch = 0 : i64, scratch_operands = 1 : i64, tpu.core_type = #tpu.core_type<tc>, window_params = [{transform_indices = @transform_0, window_bounds = array<i64: 8, 256>}, {transform_indices = @transform_1, window_bounds = array<i64: 1, 8>}]} {
    %c0_i32 = arith.constant 0 : i32
    %0 = arith.cmpi eq, %arg1, %c0_i32 : i32
    %1 = arith.extui %0 : i1 to i32
    %c0_i32_0 = arith.constant 0 : i32
    %2 = arith.cmpi ne, %1, %c0_i32_0 : i32
    scf.if %2 {
      %cst_9 = arith.constant 0.000000e+00 : f32
      %12 = vector.broadcast %cst_9 : f32 to vector<1x8xf32>
      %c0_10 = arith.constant 0 : index
      %c0_11 = arith.constant 0 : index
      %13 = vector.load %arg4[%c0_10, %c0_11] : memref<1x8xf32, #tpu.memory_space<vmem>>, vector<1x8xf32>
      tpu.vector_store %arg4[%c0_10, %c0_11], %12 {strides = array<i32>} : memref<1x8xf32, #tpu.memory_space<vmem>>, vector<1x8xf32>,
    } else {
    }
    %c0 = arith.constant 0 : index
    %c0_1 = arith.constant 0 : index
    %3 = vector.load %arg2[%c0, %c0_1] : memref<8x256xf32, #tpu.memory_space<vmem>>, vector<8x256xf32>
    %cst = arith.constant 1.000000e+00 : f32
    %4 = vector.broadcast %cst : f32 to vector<1x256xf32>
    %c0_2 = arith.constant 0 : index
    %c0_3 = arith.constant 0 : index
    %5 = vector.load %arg4[%c0_2, %c0_3] : memref<1x8xf32, #tpu.memory_space<vmem>>, vector<1x8xf32>
    %cst_4 = arith.constant dense<0.000000e+00> : vector<1x8xf32>
    %6 = tpu.matmul %4, %3, %cst_4 {dimension_numbers = #tpu.dot_dimension_numbers<[1], [1], [0], [0], [0, 0, 1, 0], [], []>, precision = #tpu.contract_precision<fp32>} : vector<1x256xf32>, vector<8x256xf32>, vector<1x8xf32> -> vector<1x8xf32>
    %7 = arith.addf %5, %6 : vector<1x8xf32>
    %c0_5 = arith.constant 0 : index
    %c0_6 = arith.constant 0 : index
    %8 = vector.load %arg4[%c0_5, %c0_6] : memref<1x8xf32, #tpu.memory_space<vmem>>, vector<1x8xf32>
    tpu.vector_store %arg4[%c0_5, %c0_6], %7 {strides = array<i32>} : memref<1x8xf32, #tpu.memory_space<vmem>>, vector<1x8xf32>,
    %c0_i32_7 = arith.constant 0 : i32
    %9 = arith.cmpi eq, %arg1, %c0_i32_7 : i32
    %10 = arith.extui %9 : i1 to i32
    %c0_i32_8 = arith.constant 0 : i32
    %11 = arith.cmpi ne, %10, %c0_i32_8 : i32
    scf.if %11 {
      %c0_9 = arith.constant 0 : index
      %c0_10 = arith.constant 0 : index
      %12 = vector.load %arg4[%c0_9, %c0_10] : memref<1x8xf32, #tpu.memory_space<vmem>>, vector<1x8xf32>
      %cst_11 = arith.constant 3.906250e-03 : f32
      %13 = vector.broadcast %cst_11 : f32 to vector<1x8xf32>
      %14 = arith.mulf %12, %13 : vector<1x8xf32>
      %c0_12 = arith.constant 0 : index
      %c0_13 = arith.constant 0 : index
      %15 = vector.load %arg3[%c0_12, %c0_13] : memref<1x8xf32, #tpu.memory_space<vmem>>, vector<1x8xf32>
      tpu.vector_store %arg3[%c0_12, %c0_13], %14 {strides = array<i32>} : memref<1x8xf32, #tpu.memory_space<vmem>>, vector<1x8xf32>,
    } else {
    }
    return
  }
  func.func @transform_0(%arg0: i32, %arg1: i32) -> (i32, i32) {
    %c0_i32 = arith.constant 0 : i32
    return %arg0, %arg1 : i32, i32
  }
  func.func @transform_1(%arg0: i32, %arg1: i32) -> (i32, i32) {
    %c0_i32 = arith.constant 0 : i32
    %c0_i32_0 = arith.constant 0 : i32
    return %c0_i32, %arg0 : i32, i32
  }
}

</mosaic_0001>

<bundles_post_ra>
// kernel: tpu_custom_call.1
= control target key start
LH: loop header
LB: loop body
LE: loop exit
PB: predicated region body
PF: predicated region fallthrough
CT: control target
= control target key end

     0   :  { %6 = vsyncpa [#allocation4], 0  ;;  %s571_s0 = inlined_call_operand.hbm [shape: f32[8,256], index: 0, kind: input, shape index: {}]   ;;  %s572_s1 = inlined_call_operand.hbm [shape: f32[1,8], index: 1, kind: output, shape index: {}]  }
   0x1   :  { %7 = vsyncpa [#allocation5], 0  ;;  %s548_s6 = smov [#allocation3]  }
   0x2   :  { %s14_s7 = sshll.u32 %s548_s6, 4  ;;  %s15_s7 = int_to_ptr.vmem [resolvable:$true] %s14_s7 }
   0x3   :  { %s512_s8 = scalar_lea.vmem %s15_s7, 256  ;;  %p517_p1 = scmp.lt.s32.totalorder %s15_s7, %s15_s7 }
   0x4   :  { %p513_p0 = scmp.ne.s32.totalorder %s15_s7, %s512_s8  ;;  %p518_p2 = scmp.lt.s32.totalorder %s512_s8, %s512_s8 }
   0x6   :  { %p519_p3 = por %p518_p2, %p517_p1 }
   0x8   :  { %p520_p4 = pnand %p519_p3, %p513_p0 }
   0xa   :  { %523 = shalt.err (!%p520_p4)
}
   0xb   :  { %17 = dma.hbm_to_vmem [thread:$0]  %s571_s0, 256, %s15_s7, [#allocation4]  }
   0xc   :  { %544 = dma.done.wait [#allocation4], 256  }
   0xd   :  { %545 = vsyncadd [#allocation4], 4294967040  ;;  %v549_v0 = vmov 0.0   ;;  %v550_v1 = vmov 1.0   ;;  %v28_v2 = vld [vmem:[#allocation3 + $0x8] sm:$0xff]  ;;  %v27_v3 = vld [vmem:[#allocation3] sm:$0xff] }
   0xe   :  { %96 = vmatprep.mubr.f32.mxu0 %v549_v0  ;;  %176 = vmatprep.mubr.f32.mxu1 %v550_v1  ;;  %v60_v4 = vand.u32 4294901760, %v28_v2  ;;  %v62_v5 = vand.u32 4294901760, %v27_v3  ;;  %vm25_vm0 = vcmask 57344   ;;  %s551_s0 = smov [#allocation6]  }
   0xf   :  { %26 = vst.msk [vmem:[#allocation2] sm:$0x1] %vm25_vm0, %v549_v0  ;;  %s491_s11 = sshll.u32 %s551_s0, 4  ;;  %s492_s11 = int_to_ptr.vmem [resolvable:$true] %s491_s11 }
  0x10   :  { %61 = vmatprep.subr.mxu0 %v60_v4  ;;  %v133_v6 = vsub.f32 %v28_v2, %v60_v4  ;;  %v139_v7 = vsub.f32 %v27_v3, %v62_v5  ;;  %s524_s12 = scalar_lea.vmem %s492_s11, 16  ;;  %s528_s13 = scalar_lea.vmem %s492_s11, 32 }
  0x11   :  { %63 = vmatpush1.xpose.msra.mxu0 %v62_v5  ;;  %p525_p5 = scmp.ne.s32.totalorder %s492_s11, %s524_s12  ;;  %p529_p6 = scmp.lt.s32.totalorder %s492_s11, %s492_s11 }
  0x12   :  { %v134_v8 = vand.u32 4294901760, %v133_v6  ;;  %v140_v9 = vand.u32 4294901760, %v139_v7  ;;  %214 = vmatprep.subr.mxu0 %v133_v6  ;;  %p530_p7 = scmp.lt.s32.totalorder %s528_s13, %s524_s12 }
  0x14   :  { %v135_v10 = vsub.f32 %v133_v6, %v134_v8  ;;  %97 = vmatmul.mubr.f32.vlgmr.msra.gmra.mxu0 %v549_v0  ;;  %v141_v11 = vsub.f32 %v139_v7, %v140_v9  ;;  %p531_p8 = por %p530_p7, %p529_p6 }
  0x15   :  { %217 = vmatpush1.xpose.msra.mxu0 %v139_v7  ;;  %250 = vmatprep.mubr.f32.mxu0 %v549_v0 }
  0x16   :  { %v136_v12 = vand.u32 4294901760, %v135_v10  ;;  %v142_v13 = vand.u32 4294901760, %v141_v11  ;;  %361 = vmatprep.subr.mxu0 %v134_v8  ;;  %v29_v28 = vld [vmem:[#allocation2] sm:$0x1]  ;;  %p532_p9 = pnand %p531_p8, %p525_p5 }
  0x18   :  { %137 = vmatprep.subr.mxu1 %v136_v12  ;;  %251 = vmatmul.mubr.f32.vlgmr.msra.gmra.mxu0 %v549_v0 }
  0x19   :  { %143 = vmatpush1.xpose.msra.mxu1 %v142_v13  ;;  %365 = vmatpush1.xpose.msra.mxu0 %v140_v9 }
  0x1a   :  { %287 = vmatprep.subr.mxu1 %v60_v4  ;;  %398 = vmatprep.mubr.f32.mxu0 %v550_v1 }
  0x1c   :  { %177 = vmatmul.mubr.f32.vlgmr.msra.gmra.mxu1 %v550_v1  ;;  %399 = vmatmul.mubr.f32.vlgmr.msra.gmra.mxu0 %v550_v1 }
  0x1d   :  { %289 = vmatpush1.xpose.msra.mxu1 %v62_v5  ;;  %322 = vmatprep.mubr.f32.mxu1 %v549_v0 }
  0x1e   :  { %435 = vmatprep.subr.mxu1 %v60_v4 }
  0x20   :  { %323 = vmatmul.mubr.f32.vlgmr.msra.gmra.mxu1 %v549_v0 }
  0x21   :  { %437 = vmatpush1.xpose.msra.mxu1 %v62_v5  ;;  %470 = vmatprep.mubr.f32.mxu1 %v550_v1 }
  0x24   :  { %471 = vmatmul.mubr.f32.vlgmr.msra.gmra.mxu1 %v550_v1 }
  0xd4   :  { %v98_v14 = vpop.f32.mrf.mxu0 }
  0xd6   :  { %v100_v15 = vpop.f32.mrf.mxu0 }
  0xd8   :  { %v252_v16 = vpop.f32.mrf.mxu0 }
  0xda   :  { %v254_v17 = vpop.f32.mrf.mxu0 }
  0xdc   :  { %v178_v18 = vpop.f32.mrf.mxu1  ;;  %v400_v19 = vpop.f32.mrf.mxu0 }
  0xdd   :  { %v179_v20 = vadd.f32 %v178_v18, %v98_v14 }
  0xde   :  { %v180_v21 = vpop.f32.mrf.mxu1  ;;  %v402_v22 = vpop.f32.mrf.mxu0 }
  0xdf   :  { %v253_v23 = vadd.f32 %v252_v16, %v179_v20 }
  0xe0   :  { %v324_v24 = vpop.f32.mrf.mxu1 }
  0xe1   :  { %v325_v25 = vadd.f32 %v324_v24, %v253_v23 }
  0xe2   :  { %v326_v26 = vpop.f32.mrf.mxu1 }
  0xe3   :  { %v401_v27 = vadd.f32 %v400_v19, %v325_v25 }
  0xe4   :  { %v472_v29 = vpop.f32.mrf.mxu1 }
  0xe5   :  { %v473_v30 = vadd.f32 %v472_v29, %v401_v27 }
  0xe6   :  { %v474_v31 = vpop.f32.mrf.mxu1 }
  0xe7   :  { %v476_v32 = vadd.f32 %v473_v30, %v29_v28 }
  0xe9   :  { %478 = vst.msk [vmem:[#allocation2] sm:$0x1] %vm25_vm0, %v476_v32 }
  0xf0   :  { %v482_v33 = vld [vmem:[#allocation2] sm:$0x1] }
  0xf1   :  { %v483_v34 = vmul.f32 0.00390625, %v482_v33 }
  0xf3   :  { %484 = vst.msk [vmem:[#allocation6] sm:$0x1] %vm25_vm0, %v483_v34 }
  0xf4   :  { %535 = shalt.err (!%p532_p9)
}
  0xf5   :  { %494 = dma.vmem_to_hbm [thread:$0]  %s492_s11, 16, %s572_s1, [#allocation5]  }
  0xf6   :  { %546 = dma.done.wait [#allocation5], 16  }
  0xf7   :  { %547 = vsyncadd [#allocation5], 4294967280 }
  0xf8   :  { %498 = vsyncpa [#allocation4], 1 }
  0xf9   :  { %499 = vsyncpa [#allocation5], 1 }

</bundles_post_ra>
